<compile_context>
chip_gen: v7x
topology: tpu7x:2x2x1
jax: 0.10.0
libtpu: 0.0.40
codegen_flags: <defaults>
</compile_context>

<pallas_src>
import jax
import jax.numpy as jnp
import numpy as np
from jax.experimental import pallas as pl
from jax.experimental.pallas import tpu as pltpu


def _round_up(x, m):
    return ((x + m - 1) // m) * m


# ------------------------------------------------------------------ softmax kernel
def _softmax_p1_kernel(ht_ref, p_ref):
    # ht_ref: (C, tile) logits; p_ref: (1, tile) class-1 probability.
    ht = ht_ref[...].astype(jnp.float32)
    m = jnp.max(ht, axis=0, keepdims=True)
    e = jnp.exp(ht - m)
    # No approx reciprocal / reduced precision here: exact values feed the == tie test.
    p_ref[...] = e[1:2, :] / jnp.sum(e, axis=0, keepdims=True)


# ------------------------------------------------------------------ pairwise kernel
def _pairwise_auc_kernel(p_col_ref, y_col_ref, p_row_ref, w_row_ref, out_ref, acc_ref):
    j = pl.program_id(1)

    @pl.when(j == 0)
    def _init():
        acc_ref[...] = jnp.zeros_like(acc_ref)

    p_col = p_col_ref[...]            # (Ti, 1)
    p_row = p_row_ref[...]            # (1, Tj)
    w_row = w_row_ref[...]            # (1, Tj) == (1 - y_j); 0 on padded columns

    gt = (p_col > p_row).astype(jnp.float32)
    ge = (p_col >= p_row).astype(jnp.float32)
    credit = (gt + ge) * w_row        # (Ti, Tj); credit / 2 == [>] + 0.5 * [==]
    acc_ref[...] += jnp.sum(credit, axis=-1, keepdims=True)        # (Ti, 1)

    @pl.when(j == pl.num_programs(1) - 1)
    def _finalize():
        # y_i mask applied once per i-tile (outside the N^2 loop); 0.5 scale in wrapper.
        psum = jnp.sum(y_col_ref[...] * acc_ref[...], keepdims=True)   # (1, 1)
        out_ref[...] = jnp.zeros_like(out_ref) + psum                  # lane-dense store


def roc_auc_pallas(hh, yy, *, ti=None, tj=None):
    """hh: (N, C) logits, yy: (N,) binary {0,1} labels.  Returns scalar float32 AUC."""
    N, C = hh.shape

    # Tile sizes: lane (j) tile multiple of 128, sublane (i) tile multiple of 8.
    # Defaults keep the live (Ti, Tj) f32 block at 4 MiB, safe for v7x's VMEM.
    if tj is None:
        tj = 2048 if N >= 2048 else _round_up(N, 128)
    if ti is None:
        ti = 512 if N >= 512 else _round_up(N, 8)
    assert ti % 8 == 0 and tj % 128 == 0

    n_i = _round_up(N, ti)
    n_j = _round_up(N, tj)
    gi, gj = n_i // ti, n_j // tj

    hh = hh.astype(jnp.float32)
    y = yy.astype(jnp.float32)

    # ---- kernel 1: class-1 probability, computed once, lane-dense ----------------
    ht_pad = jnp.zeros((C, n_j), jnp.float32).at[:, :N].set(hh.T)   # layout plumbing
    p_row = pl.pallas_call(
        _softmax_p1_kernel,
        out_shape=jax.ShapeDtypeStruct((1, n_j), jnp.float32),
        grid_spec=pltpu.PrefetchScalarGridSpec(
            num_scalar_prefetch=0,
            grid=(n_j // 128,),
            in_specs=[pl.BlockSpec((C, 128), lambda j: (0, j))],
            out_specs=pl.BlockSpec((1, 128), lambda j: (0, j)),
        ),
        compiler_params=pltpu.CompilerParams(
            dimension_semantics=("arbitrary",),
            vmem_limit_bytes=32 * 1024 * 1024,
        ),
    )(ht_pad)

    # Column/row views of the SAME probability vector -> exact tie detection.
    p_vec = p_row[0, :N]
    p_col = jnp.zeros((n_i, 1), jnp.float32).at[:N, 0].set(p_vec)
    y_col = jnp.zeros((n_i, 1), jnp.float32).at[:N, 0].set(y)          # padded rows: y = 0
    w_row = jnp.zeros((1, n_j), jnp.float32).at[0, :N].set(1.0 - y)    # padded cols: w = 0

    # ---- kernel 2: tiled O(N^2) pairwise credit -----------------------------------
    partials = pl.pallas_call(
        _pairwise_auc_kernel,
        out_shape=jax.ShapeDtypeStruct((gi, 8, 128), jnp.float32),
        grid_spec=pltpu.PrefetchScalarGridSpec(
            num_scalar_prefetch=0,
            grid=(gi, gj),
            in_specs=[
                pl.BlockSpec((ti, 1), lambda i, j: (i, 0)),     # p_col
                pl.BlockSpec((ti, 1), lambda i, j: (i, 0)),     # y_col
                pl.BlockSpec((1, tj), lambda i, j: (0, j)),     # p_row
                pl.BlockSpec((1, tj), lambda i, j: (0, j)),     # w_row
            ],
            out_specs=pl.BlockSpec((1, 8, 128), lambda i, j: (i, 0, 0)),
            scratch_shapes=[pltpu.VMEM((ti, 1), jnp.float32)],
        ),
        compiler_params=pltpu.CompilerParams(
            dimension_semantics=("parallel", "arbitrary"),
            vmem_limit_bytes=32 * 1024 * 1024,
        ),
    )(p_col, y_col, p_row, w_row)

    # ---- O(gi) / O(1) glue on the final reduced values (needed for the parallel i axis)
    num = 0.5 * jnp.sum(partials[:, 0, 0])
    n_pos = jnp.sum(y)
    n_neg = jnp.float32(N) - n_pos
    denom = n_pos * n_neg
    # TODO(synk): sklearn raises on a single-class batch; we mirror the module's
    # `except: return 0.5` path with this denom == 0 check on the *final* reduced values.
    auc = jnp.where(denom > 0.0, num / jnp.maximum(denom, 1.0), jnp.float32(0.5))
    return auc.astype(jnp.float32)


def _reference_auc(hh, yy):
    p = np.asarray(jax.nn.softmax(jnp.asarray(hh, jnp.float32), axis=1)[:, 1])
    y = np.asarray(yy)
    pos = p[y == 1]
    neg = p[y == 0]
    if len(pos) == 0 or len(neg) == 0:
        return np.float32(0.5)
    num = (pos[:, None] > neg[None, :]).sum() + 0.5 * (pos[:, None] == neg[None, :]).sum()
    return np.float32(num / (len(pos) * len(neg)))


if __name__ == "__main__":
    key = jax.random.PRNGKey(0)
    k1, k2 = jax.random.split(key)

    # Case 1: tiny batch, default (single-tile) configuration.
    N1, C = 16, 2
    hh1 = jax.random.normal(k1, (N1, C), dtype=jnp.float32)
    yy1 = jnp.array([0, 1] * (N1 // 2), dtype=jnp.int32)
    auc1 = jax.block_until_ready(roc_auc_pallas(hh1, yy1))
    assert auc1.dtype == jnp.float32
    assert np.allclose(np.asarray(auc1), _reference_auc(hh1, yy1), atol=1e-5), auc1

    # Case 2: small tiles force a multi-tile grid (19 x 3) + padding on both axes.
    N2 = 300
    hh2 = jax.random.normal(k2, (N2, C), dtype=jnp.float32)
    yy2 = (jax.random.uniform(k2, (N2,)) > 0.5).astype(jnp.int32)
    auc2 = jax.block_until_ready(roc_auc_pallas(hh2, yy2, ti=16, tj=128))
    assert np.allclose(np.asarray(auc2), _reference_auc(hh2, yy2), atol=1e-5), auc2

    # Case 3: single-class batch -> undefined AUC -> 0.5 (mirrors the try/except path).
    yy3 = jnp.zeros((N1,), dtype=jnp.int32)
    auc3 = jax.block_until_ready(roc_auc_pallas(hh1, yy3))
    assert np.allclose(np.asarray(auc3), 0.5), auc3

    print("KERNEL_OK")
</pallas_src>

<mosaic_0001>
module attributes {stable_mosaic.version = 11 : i64} {
  func.func @_softmax_p1_kernel(%arg0: i32, %arg1: memref<2x128xf32, #tpu.memory_space<vmem>>, %arg2: memref<1x128xf32, #tpu.memory_space<vmem>>) attributes {dimension_semantics = [#tpu.dimension_semantics<arbitrary>], iteration_bounds = array<i64: 1>, scalar_prefetch = 0 : i64, scratch_operands = 0 : i64, tpu.core_type = #tpu.core_type<tc>, window_params = [{transform_indices = @transform_0, window_bounds = array<i64: 2, 128>}, {transform_indices = @transform_1, window_bounds = array<i64: 1, 128>}]} {
    %c0 = arith.constant 0 : index
    %c0_0 = arith.constant 0 : index
    %0 = vector.load %arg1[%c0, %c0_0] : memref<2x128xf32, #tpu.memory_space<vmem>>, vector<2x128xf32>
    %cst = arith.constant dense<0xFF800000> : vector<128xf32>
    %1 = vector.multi_reduction <maximumf>, %0, %cst [0] : vector<2x128xf32> to vector<128xf32>
    %2 = vector.shape_cast %1 : vector<128xf32> to vector<1x128xf32>
    %3 = vector.broadcast %2 : vector<1x128xf32> to vector<2x128xf32>
    %4 = arith.subf %0, %3 : vector<2x128xf32>
    %5 = math.exp %4 : vector<2x128xf32>
    %6 = vector.extract_strided_slice %5 {offsets = [1, 0], sizes = [1, 128], strides = [1, 1]} : vector<2x128xf32> to vector<1x128xf32>
    %cst_1 = arith.constant dense<0.000000e+00> : vector<128xf32>
    %7 = vector.multi_reduction <add>, %5, %cst_1 [0] : vector<2x128xf32> to vector<128xf32>
    %8 = vector.shape_cast %7 : vector<128xf32> to vector<1x128xf32>
    %9 = arith.divf %6, %8 : vector<1x128xf32>
    %c0_2 = arith.constant 0 : index
    %c0_3 = arith.constant 0 : index
    %10 = vector.load %arg2[%c0_2, %c0_3] : memref<1x128xf32, #tpu.memory_space<vmem>>, vector<1x128xf32>
    tpu.vector_store %arg2[%c0_2, %c0_3], %9 {strides = array<i32>} : memref<1x128xf32, #tpu.memory_space<vmem>>, vector<1x128xf32>,
    return
  }
  func.func @transform_0(%arg0: i32) -> (i32, i32) {
    %c0_i32 = arith.constant 0 : i32
    %c0_i32_0 = arith.constant 0 : i32
    return %c0_i32, %arg0 : i32, i32
  }
  func.func @transform_1(%arg0: i32) -> (i32, i32) {
    %c0_i32 = arith.constant 0 : i32
    %c0_i32_0 = arith.constant 0 : i32
    return %c0_i32, %arg0 : i32, i32
  }
}

</mosaic_0001>

<bundles_post_ra>
// kernel: tpu_custom_call.1
= control target key start
LH: loop header
LB: loop body
LE: loop exit
PB: predicated region body
PF: predicated region fallthrough
CT: control target
= control target key end

     0   :  { %6 = vsyncpa [#allocation3], 0  ;;  %s148_s0 = inlined_call_operand.hbm [shape: f32[2,128], index: 0, kind: input, shape index: {}]   ;;  %s149_s1 = inlined_call_operand.hbm [shape: f32[1,128], index: 1, kind: output, shape index: {}]  }
   0x1   :  { %7 = vsyncpa [#allocation4], 0  ;;  %s112_s6 = smov [#allocation2]   ;;  %s64_s10 = scalar_lea.hbm %s148_s0, 32 }
   0x2   :  { %s14_s7 = sshll.u32 %s112_s6, 4  ;;  %p65_p0 = scmp.ne.s32.totalorder %s148_s0, %s64_s10  ;;  %s15_s7 = int_to_ptr.vmem [resolvable:$true] %s14_s7 }
   0x3   :  { %p68_p1 = scmp.lt.u32.totalorder %s64_s10, %s148_s0 }
   0x5   :  { %p70_p2 = pnand %p68_p1, %p65_p0 }
   0x7   :  { %73 = shalt.err (!%p70_p2)
}
   0x8   :  { %s74_s15 = scalar_lea.vmem %s15_s7, 32  ;;  %p79_p4 = scmp.lt.s32.totalorder %s15_s7, %s15_s7 }
   0x9   :  { %p75_p3 = scmp.ne.s32.totalorder %s15_s7, %s74_s15  ;;  %p80_p5 = scmp.lt.s32.totalorder %s74_s15, %s74_s15 }
   0xb   :  { %p81_p6 = por %p80_p5, %p79_p4 }
   0xd   :  { %p82_p7 = pnand %p81_p6, %p75_p3 }
   0xf   :  { %85 = shalt.err (!%p82_p7)
}
  0x10   :  { %17 = dma.hbm_to_vmem [thread:$0]  %s148_s0, 32, %s15_s7, [#allocation3]  }
  0x11   :  { %108 = dma.done.wait [#allocation3], 32  }
  0x12   :  { %109 = vsyncadd [#allocation3], 4294967264  ;;  %vm22_vm0 = vcmask 1041408   ;;  %v21_v0 = vld [vmem:[#allocation2] sm:$0x3]  ;;  %s113_s0 = smov [#allocation5]  }
  0x13   :  { %v23_v1 = vsel %vm22_vm0, %v21_v0, -inf  ;;  %s49_s18 = sshll.u32 %s113_s0, 4  ;;  %s50_s18 = int_to_ptr.vmem [resolvable:$true] %s49_s18 }
  0x14   :  { %v24_v2 = vrot.slane %v23_v1, 4  ;;  %s86_s19 = scalar_lea.vmem %s50_s18, 16  ;;  %s90_s20 = scalar_lea.vmem %s50_s18, 32 }
  0x15   :  { %p87_p8 = scmp.ne.s32.totalorder %s50_s18, %s86_s19  ;;  %p91_p9 = scmp.lt.s32.totalorder %s50_s18, %s50_s18 }
  0x16   :  { %v25_v3 = vmax.f32 %v23_v1, %v24_v2  ;;  %p92_p10 = scmp.lt.s32.totalorder %s90_s20, %s86_s19 }
  0x18   :  { %v26_v4 = vrot.slane %v25_v3, 2  ;;  %p93_p11 = por %p92_p10, %p91_p9 }
  0x1a   :  { %v27_v5 = vmax.f32 %v25_v3, %v26_v4  ;;  %p94_p12 = pnand %p93_p11, %p87_p8 }
  0x1c   :  { %v28_v6 = vrot.slane %v27_v5, 1 }
  0x1e   :  { %v29_v7 = vmax.f32 %v27_v5, %v28_v6 }
  0x20   :  { %v30_v8 = vsub.f32 %v21_v0, %v29_v7 }
  0x22   :  { %v31_v9 = vmul.f32 1.442695, %v30_v8 }
  0x24   :  { %60 = vpow2.f32 %v31_v9 }
  0x2e   :  { %v61_v10 = vpop.eup %60 }
  0x2f   :  { %v33_v11 = vsel %vm22_vm0, %v61_v10, 0.0 }
  0x30   :  { %v34_v12 = vrot.slane %v33_v11, 4 }
  0x32   :  { %v35_v13 = vadd.f32 %v34_v12, %v33_v11 }
  0x34   :  { %v36_v14 = vrot.slane %v35_v13, 2 }
  0x36   :  { %v37_v15 = vadd.f32 %v36_v14, %v35_v13 }
  0x38   :  { %v38_v16 = vrot.slane %v37_v15, 1 }
  0x3a   :  { %v39_v17 = vadd.f32 %v38_v16, %v37_v15 }
  0x3c   :  { %62 = vrcp.f32 %v39_v17 }
  0x46   :  { %v63_v18 = vpop.eup %62 }
  0x47   :  { %v41_v19 = vmul.f32 %v63_v18, %v61_v10 }
  0x49   :  { %42 = vst [vmem:[#allocation5 - $0x1] sm:$0x2] %v41_v19 }
  0x4a   :  { %97 = shalt.err (!%p94_p12)
}
  0x4b   :  { %s98_s23 = scalar_lea.hbm %s149_s1, 16 }
  0x4c   :  { %p99_p13 = scmp.ne.s32.totalorder %s149_s1, %s98_s23  ;;  %p102_p0 = scmp.lt.u32.totalorder %s98_s23, %s149_s1 }
  0x4e   :  { %p104_p1 = pnand %p102_p0, %p99_p13 }
  0x50   :  { %107 = shalt.err (!%p104_p1)
}
  0x51   :  { %52 = dma.vmem_to_hbm [thread:$0]  %s50_s18, 16, %s149_s1, [#allocation4]  }
  0x52   :  { %110 = dma.done.wait [#allocation4], 16  }
  0x53   :  { %111 = vsyncadd [#allocation4], 4294967280 }
  0x54   :  { %56 = vsyncpa [#allocation3], 1 }
  0x55   :  { %57 = vsyncpa [#allocation4], 1 }

</bundles_post_ra>
